<compile_context>
chip_gen: v7x
topology: tpu7x:2x2x1
jax: 0.10.0
libtpu: 0.0.40
codegen_flags: <defaults>
</compile_context>

<pallas_src>
import functools

import jax
import jax.numpy as jnp
from jax.experimental import pallas as pl
from jax.experimental.pallas import tpu as pltpu


_MAX_TILE_M = 4096          # rows per grid step (a few MB of VMEM at f32)
_MULTI_CORE_MIN_B = 512     # below this, splitting across TensorCores isn't worth it
_PACKED_FALLBACK = [False]  # set once if Mosaic rejects the in-kernel lane fold


def _round_up(x: int, m: int) -> int:
    return ((x + m - 1) // m) * m


@functools.lru_cache(maxsize=None)
def _num_tensorcores() -> int:
    """TensorCores a single Pallas kernel can shard over (v7x/megacore: 2, v5e/v6e: 1)."""
    try:
        info = pltpu.get_tpu_info()
        for name in ("num_cores", "core_count", "num_tensorcores", "tensorcore_count"):
            v = getattr(info, name, None)
            if isinstance(v, int) and v > 0:
                return max(1, min(2, v))
    except Exception:
        pass
    try:
        kind = jax.devices()[0].device_kind.lower()
    except Exception:
        return 1
    single_core = ("v5e", "v5 lite", "v5lite", "v6e", "v6 lite", "v6lite")
    if any(t in kind for t in single_core):
        return 1
    # v7x / megacore parts (or unknown): assume 2.  If wrong this only costs one
    # extra ~0.35us grid step for medium batches; if right it is up to a 2x win.
    return 2


def _choose_tile_m(B: int, n_cores: int) -> int:
    if B <= _MAX_TILE_M and (n_cores <= 1 or B < _MULTI_CORE_MIN_B):
        return B                                    # whole batch in one grid step
    per_core = pl.cdiv(B, n_cores)                  # >= 1 step per TensorCore
    return min(_MAX_TILE_M, _round_up(per_core, 32))


def _decode_kernel(z_ref, w1_ref, b1_ref, w2_ref, b2_ref, o_ref):
    # Two MXU matmuls + ReLU + row-wise stable softmax, all resident in VMEM.
    z = z_ref[...]                                                       # (TM, L)
    h = jnp.dot(z, w1_ref[...], preferred_element_type=jnp.float32)      # (TM, H) f32
    h = jnp.maximum(h + b1_ref[...].astype(jnp.float32), 0.0)            # bias + ReLU
    logits = jnp.dot(h.astype(w2_ref.dtype), w2_ref[...],
                     preferred_element_type=jnp.float32)                 # (TM, C) f32
    logits = logits + b2_ref[...].astype(jnp.float32)

    # Numerically stable softmax along the last axis == torch Softmax(dim=1).
    m = jnp.max(logits, axis=-1, keepdims=True)
    e = jnp.exp(logits - m)
    s = jnp.sum(e, axis=-1, keepdims=True)
    # EUP approximate reciprocal + one Newton-Raphson step: keeps the divide off
    # the VALU while staying within ~f32 accuracy.
    r = pl.reciprocal(s, approx=True)
    r = r * (2.0 - s * r)
    probs = e * r                                                        # (TM, C)

    # Lane-dense store: o_ref is either (TM, C) (plain path) or
    # (TM//pack, pack*C) == (TM//pack, 128) (row-major fold -> unmasked full-lane
    # stores and a dense output DMA).
    if probs.shape == tuple(o_ref.shape):
        o_ref[...] = probs.astype(o_ref.dtype)
    else:
        o_ref[...] = probs.reshape(o_ref.shape).astype(o_ref.dtype)


def _build_call(tile_m, L, H, C, out_rows, out_cols, out_block_rows, n_tiles, out_dtype):
    return pl.pallas_call(
        _decode_kernel,
        out_shape=jax.ShapeDtypeStruct((out_rows, out_cols), out_dtype),
        grid_spec=pltpu.PrefetchScalarGridSpec(
            num_scalar_prefetch=0,
            grid=(n_tiles,),
            in_specs=[
                pl.BlockSpec((tile_m, L), lambda i: (i, 0)),   # z tile over the batch
                # Constant block index -> weights/biases DMA'd once and resident
                # across all grid steps.
                pl.BlockSpec((L, H), lambda i: (0, 0)),        # W1 (whole)
                pl.BlockSpec((1, H), lambda i: (0, 0)),        # b1
                pl.BlockSpec((H, C), lambda i: (0, 0)),        # W2 (whole)
                pl.BlockSpec((1, C), lambda i: (0, 0)),        # b2
            ],
            out_specs=pl.BlockSpec((out_block_rows, out_cols), lambda i: (i, 0)),
        ),
        compiler_params=pltpu.CompilerParams(
            dimension_semantics=("parallel",)),
    )


def vae_decode(z, w1, b1, w2, b2, *, tile_m=None):
    """softmax(relu(z @ W1 + b1) @ W2 + b2, axis=1); weights stored (in, out)."""
    B, L = z.shape
    H = w1.shape[1]
    C = w2.shape[1]
    b1_2d = b1.reshape(1, H)
    b2_2d = b2.reshape(1, C)
    out_dtype = z.dtype

    # Lane-packing factor: fold `pack` batch rows into one 128-lane output row.
    pack = 128 // C if (0 < C < 128 and 128 % C == 0) else 1

    if tile_m is None:
        tile_m = _choose_tile_m(B, _num_tensorcores())
    tile_m = int(tile_m)
    if tile_m >= B:
        tile_m = B                                   # block == full array dims: always legal
    else:
        align = 8 * pack if (pack > 1 and B % pack == 0) else 8
        tile_m = max(align, (tile_m // align) * align)
        if tile_m >= B:
            tile_m = B
    n_tiles = pl.cdiv(B, tile_m)

    use_packed = (pack > 1 and B % pack == 0
                  and (tile_m == B or tile_m % (8 * pack) == 0)
                  and not _PACKED_FALLBACK[0])

    args = (z, w1, b1_2d, w2, b2_2d)

    if use_packed:
        try:
            call = _build_call(tile_m, L, H, C,
                               out_rows=B // pack, out_cols=pack * C,
                               out_block_rows=tile_m // pack,
                               n_tiles=n_tiles, out_dtype=out_dtype)
            out = call(*args)
            # Row-major (B//pack, pack*C) -> (B, C) is a free bitcast reshape.
            return out.reshape(B, C)
        except Exception:
            # Mosaic on this jax version rejected the in-kernel lane fold; remember
            # that and fall back to the previously-validated plain layout.
            _PACKED_FALLBACK[0] = True

    call = _build_call(tile_m, L, H, C,
                       out_rows=B, out_cols=C, out_block_rows=tile_m,
                       n_tiles=n_tiles, out_dtype=out_dtype)
    return call(*args)


def vae_decode_ref(z, w1, b1, w2, b2):
    h = jnp.maximum(z @ w1 + b1, 0.0)
    logits = h @ w2 + b2
    return jax.nn.softmax(logits, axis=1)


if __name__ == "__main__":
    # Module hyperparameters (small, consistent with VAE_decode's __init__).
    latent_dimension = 16
    layer_1d = 64
    composition_len = 32

    key = jax.random.PRNGKey(0)
    kz, kw1, kb1, kw2, kb2, kz2, kz3 = jax.random.split(key, 7)

    # PyTorch Linear stores weight as (out, in); we initialize directly in the
    # (in, out) layout used for z @ W.
    w1 = 0.1 * jax.random.normal(kw1, (latent_dimension, layer_1d), dtype=jnp.float32)
    b1 = 0.1 * jax.random.normal(kb1, (layer_1d,), dtype=jnp.float32)
    w2 = 0.1 * jax.random.normal(kw2, (layer_1d, composition_len), dtype=jnp.float32)
    b2 = 0.1 * jax.random.normal(kb2, (composition_len,), dtype=jnp.float32)

    # --- Test 1: tiny batch, single grid step --------------------------------
    batch = 16
    z = jax.random.normal(kz, (batch, latent_dimension), dtype=jnp.float32)
    out = jax.block_until_ready(vae_decode(z, w1, b1, w2, b2))
    ref = vae_decode_ref(z, w1, b1, w2, b2)
    assert out.shape == (batch, composition_len)
    assert jnp.allclose(out, ref, atol=1e-4, rtol=1e-4), "mismatch (small batch)"
    assert jnp.allclose(jnp.sum(out, axis=1), 1.0, atol=1e-4)

    # --- Test 2: non-tile-multiple batch -> multi-step grid, boundary clamping,
    #             no wrapper pad/slice copies ---------------------------------
    batch2 = 300
    z2 = jax.random.normal(kz2, (batch2, latent_dimension), dtype=jnp.float32)
    out2 = jax.block_until_ready(vae_decode(z2, w1, b1, w2, b2, tile_m=128))
    ref2 = vae_decode_ref(z2, w1, b1, w2, b2)
    assert out2.shape == (batch2, composition_len)
    assert jnp.allclose(out2, ref2, atol=1e-4, rtol=1e-4), "mismatch (tiled batch)"
    assert jnp.allclose(jnp.sum(out2, axis=1), 1.0, atol=1e-4)

    # --- Test 3: larger batch, automatic tile / multi-core selection ---------
    batch3 = 2048
    z3 = jax.random.normal(kz3, (batch3, latent_dimension), dtype=jnp.float32)
    out3 = jax.block_until_ready(vae_decode(z3, w1, b1, w2, b2))
    ref3 = vae_decode_ref(z3, w1, b1, w2, b2)
    assert out3.shape == (batch3, composition_len)
    assert jnp.allclose(out3, ref3, atol=1e-4, rtol=1e-4), "mismatch (large batch)"

    # --- Test 4: bf16 I/O (HBM-traffic halving on v6e/v7x), f32 accumulation -
    outb = jax.block_until_ready(
        vae_decode(z3.astype(jnp.bfloat16),
                   w1.astype(jnp.bfloat16), b1.astype(jnp.bfloat16),
                   w2.astype(jnp.bfloat16), b2.astype(jnp.bfloat16)))
    assert outb.shape == (batch3, composition_len)
    assert outb.dtype == jnp.bfloat16
    assert jnp.allclose(outb.astype(jnp.float32), ref3, atol=2e-2, rtol=2e-2), \
        "mismatch (bf16 I/O)"

    print("KERNEL_OK")
</pallas_src>

<mosaic_0001>
module attributes {stable_mosaic.version = 11 : i64} {
  func.func @_decode_kernel(%arg0: i32, %arg1: memref<16x16xf32, #tpu.memory_space<vmem>>, %arg2: memref<16x64xf32, #tpu.memory_space<vmem>>, %arg3: memref<1x64xf32, #tpu.memory_space<vmem>>, %arg4: memref<64x32xf32, #tpu.memory_space<vmem>>, %arg5: memref<1x32xf32, #tpu.memory_space<vmem>>, %arg6: memref<4x128xf32, #tpu.memory_space<vmem>>) attributes {dimension_semantics = [#tpu.dimension_semantics<parallel>], iteration_bounds = array<i64: 1>, scalar_prefetch = 0 : i64, scratch_operands = 0 : i64, tpu.core_type = #tpu.core_type<tc>, window_params = [{transform_indices = @transform_0, window_bounds = array<i64: 16, 16>}, {pipeline_mode = #tpu.pipeline_mode<synchronous>, transform_indices = @transform_1, window_bounds = array<i64: 16, 64>}, {pipeline_mode = #tpu.pipeline_mode<synchronous>, transform_indices = @transform_2, window_bounds = array<i64: 1, 64>}, {pipeline_mode = #tpu.pipeline_mode<synchronous>, transform_indices = @transform_3, window_bounds = array<i64: 64, 32>}, {pipeline_mode = #tpu.pipeline_mode<synchronous>, transform_indices = @transform_4, window_bounds = array<i64: 1, 32>}, {transform_indices = @transform_5, window_bounds = array<i64: 4, 128>}]} {
    %c0 = arith.constant 0 : index
    %c0_0 = arith.constant 0 : index
    %0 = vector.load %arg1[%c0, %c0_0] : memref<16x16xf32, #tpu.memory_space<vmem>>, vector<16x16xf32>
    %c0_1 = arith.constant 0 : index
    %c0_2 = arith.constant 0 : index
    %1 = vector.load %arg2[%c0_1, %c0_2] : memref<16x64xf32, #tpu.memory_space<vmem>>, vector<16x64xf32>
    %cst = arith.constant dense<0.000000e+00> : vector<16x64xf32>
    %2 = tpu.matmul %0, %1, %cst {dimension_numbers = #tpu.dot_dimension_numbers<[1], [0], [0], [1], [0, 0, 1, 1], [], []>} : vector<16x16xf32>, vector<16x64xf32>, vector<16x64xf32> -> vector<16x64xf32>
    %c0_3 = arith.constant 0 : index
    %c0_4 = arith.constant 0 : index
    %3 = vector.load %arg3[%c0_3, %c0_4] : memref<1x64xf32, #tpu.memory_space<vmem>>, vector<1x64xf32>
    %4 = vector.broadcast %3 : vector<1x64xf32> to vector<16x64xf32>
    %5 = arith.addf %2, %4 : vector<16x64xf32>
    %cst_5 = arith.constant 0.000000e+00 : f32
    %6 = vector.broadcast %cst_5 : f32 to vector<16x64xf32>
    %7 = arith.maximumf %5, %6 : vector<16x64xf32>
    %c0_6 = arith.constant 0 : index
    %c0_7 = arith.constant 0 : index
    %8 = vector.load %arg4[%c0_6, %c0_7] : memref<64x32xf32, #tpu.memory_space<vmem>>, vector<64x32xf32>
    %cst_8 = arith.constant dense<0.000000e+00> : vector<16x32xf32>
    %9 = tpu.matmul %7, %8, %cst_8 {dimension_numbers = #tpu.dot_dimension_numbers<[1], [0], [0], [1], [0, 0, 1, 1], [], []>} : vector<16x64xf32>, vector<64x32xf32>, vector<16x32xf32> -> vector<16x32xf32>
    %c0_9 = arith.constant 0 : index
    %c0_10 = arith.constant 0 : index
    %10 = vector.load %arg5[%c0_9, %c0_10] : memref<1x32xf32, #tpu.memory_space<vmem>>, vector<1x32xf32>
    %11 = vector.broadcast %10 : vector<1x32xf32> to vector<16x32xf32>
    %12 = arith.addf %9, %11 : vector<16x32xf32>
    %cst_11 = arith.constant dense<0xFF800000> : vector<16xf32>
    %13 = vector.multi_reduction <maximumf>, %12, %cst_11 [1] : vector<16x32xf32> to vector<16xf32>
    %14 = vector.shape_cast %13 : vector<16xf32> to vector<16x1xf32>
    %15 = vector.broadcast %14 : vector<16x1xf32> to vector<16x32xf32>
    %16 = arith.subf %12, %15 : vector<16x32xf32>
    %17 = math.exp %16 : vector<16x32xf32>
    %cst_12 = arith.constant dense<0.000000e+00> : vector<16xf32>
    %18 = vector.multi_reduction <add>, %17, %cst_12 [1] : vector<16x32xf32> to vector<16xf32>
    %19 = vector.shape_cast %18 : vector<16xf32> to vector<16x1xf32>
    %20 = tpu.reciprocal %19 {approx = true} : vector<16x1xf32> -> vector<16x1xf32>
    %21 = arith.mulf %19, %20 : vector<16x1xf32>
    %cst_13 = arith.constant 2.000000e+00 : f32
    %22 = vector.broadcast %cst_13 : f32 to vector<16x1xf32>
    %23 = arith.subf %22, %21 : vector<16x1xf32>
    %24 = arith.mulf %20, %23 : vector<16x1xf32>
    %25 = vector.broadcast %24 : vector<16x1xf32> to vector<16x32xf32>
    %26 = arith.mulf %17, %25 : vector<16x32xf32>
    %27 = vector.shape_cast %26 : vector<16x32xf32> to vector<4x128xf32>
    %c0_14 = arith.constant 0 : index
    %c0_15 = arith.constant 0 : index
    %28 = vector.load %arg6[%c0_14, %c0_15] : memref<4x128xf32, #tpu.memory_space<vmem>>, vector<4x128xf32>
    tpu.vector_store %arg6[%c0_14, %c0_15], %27 {strides = array<i32>} : memref<4x128xf32, #tpu.memory_space<vmem>>, vector<4x128xf32>,
    return
  }
  func.func @transform_0(%arg0: i32) -> (i32, i32) {
    %c0_i32 = arith.constant 0 : i32
    %c0_i32_0 = arith.constant 0 : i32
    return %arg0, %c0_i32 : i32, i32
  }
  func.func @transform_1(%arg0: i32) -> (i32, i32) {
    %c0_i32 = arith.constant 0 : i32
    %c0_i32_0 = arith.constant 0 : i32
    %c0_i32_1 = arith.constant 0 : i32
    return %c0_i32, %c0_i32_0 : i32, i32
  }
  func.func @transform_2(%arg0: i32) -> (i32, i32) {
    %c0_i32 = arith.constant 0 : i32
    %c0_i32_0 = arith.constant 0 : i32
    %c0_i32_1 = arith.constant 0 : i32
    return %c0_i32, %c0_i32_0 : i32, i32
  }
  func.func @transform_3(%arg0: i32) -> (i32, i32) {
    %c0_i32 = arith.constant 0 : i32
    %c0_i32_0 = arith.constant 0 : i32
    %c0_i32_1 = arith.constant 0 : i32
    return %c0_i32, %c0_i32_0 : i32, i32
  }
  func.func @transform_4(%arg0: i32) -> (i32, i32) {
    %c0_i32 = arith.constant 0 : i32
    %c0_i32_0 = arith.constant 0 : i32
    %c0_i32_1 = arith.constant 0 : i32
    return %c0_i32, %c0_i32_0 : i32, i32
  }
  func.func @transform_5(%arg0: i32) -> (i32, i32) {
    %c0_i32 = arith.constant 0 : i32
    %c0_i32_0 = arith.constant 0 : i32
    return %arg0, %c0_i32 : i32, i32
  }
}

module attributes {stable_mosaic.version = 11 : i64} {
  func.func @_decode_kernel(%arg0: i32, %arg1: memref<16x16xf32, #tpu.memory_space<vmem>>, %arg2: memref<16x64xf32, #tpu.memory_space<vmem>>, %arg3: memref<1x64xf32, #tpu.memory_space<vmem>>, %arg4: memref<64x32xf32, #tpu.memory_space<vmem>>, %arg5: memref<1x32xf32, #tpu.memory_space<vmem>>, %arg6: memref<16x32xf32, #tpu.memory_space<vmem>>) attributes {dimension_semantics = [#tpu.dimension_semantics<parallel>], iteration_bounds = array<i64: 1>, scalar_prefetch = 0 : i64, scratch_operands = 0 : i64, tpu.core_type = #tpu.core_type<tc>, window_params = [{transform_indices = @transform_0, window_bounds = array<i64: 16, 16>}, {pipeline_mode = #tpu.pipeline_mode<synchronous>, transform_indices = @transform_1, window_bounds = array<i64: 16, 64>}, {pipeline_mode = #tpu.pipeline_mode<synchronous>, transform_indices = @transform_2, window_bounds = array<i64: 1, 64>}, {pipeline_mode = #tpu.pipeline_mode<synchronous>, transform_indices = @transform_3, window_bounds = array<i64: 64, 32>}, {pipeline_mode = #tpu.pipeline_mode<synchronous>, transform_indices = @transform_4, window_bounds = array<i64: 1, 32>}, {transform_indices = @transform_5, window_bounds = array<i64: 16, 32>}]} {
    %c0 = arith.constant 0 : index
    %c0_0 = arith.constant 0 : index
    %0 = vector.load %arg1[%c0, %c0_0] : memref<16x16xf32, #tpu.memory_space<vmem>>, vector<16x16xf32>
    %c0_1 = arith.constant 0 : index
    %c0_2 = arith.constant 0 : index
    %1 = vector.load %arg2[%c0_1, %c0_2] : memref<16x64xf32, #tpu.memory_space<vmem>>, vector<16x64xf32>
    %cst = arith.constant dense<0.000000e+00> : vector<16x64xf32>
    %2 = tpu.matmul %0, %1, %cst {dimension_numbers = #tpu.dot_dimension_numbers<[1], [0], [0], [1], [0, 0, 1, 1], [], []>} : vector<16x16xf32>, vector<16x64xf32>, vector<16x64xf32> -> vector<16x64xf32>
    %c0_3 = arith.constant 0 : index
    %c0_4 = arith.constant 0 : index
    %3 = vector.load %arg3[%c0_3, %c0_4] : memref<1x64xf32, #tpu.memory_space<vmem>>, vector<1x64xf32>
    %4 = vector.broadcast %3 : vector<1x64xf32> to vector<16x64xf32>
    %5 = arith.addf %2, %4 : vector<16x64xf32>
    %cst_5 = arith.constant 0.000000e+00 : f32
    %6 = vector.broadcast %cst_5 : f32 to vector<16x64xf32>
    %7 = arith.maximumf %5, %6 : vector<16x64xf32>
    %c0_6 = arith.constant 0 : index
    %c0_7 = arith.constant 0 : index
    %8 = vector.load %arg4[%c0_6, %c0_7] : memref<64x32xf32, #tpu.memory_space<vmem>>, vector<64x32xf32>
    %cst_8 = arith.constant dense<0.000000e+00> : vector<16x32xf32>
    %9 = tpu.matmul %7, %8, %cst_8 {dimension_numbers = #tpu.dot_dimension_numbers<[1], [0], [0], [1], [0, 0, 1, 1], [], []>} : vector<16x64xf32>, vector<64x32xf32>, vector<16x32xf32> -> vector<16x32xf32>
    %c0_9 = arith.constant 0 : index
    %c0_10 = arith.constant 0 : index
    %10 = vector.load %arg5[%c0_9, %c0_10] : memref<1x32xf32, #tpu.memory_space<vmem>>, vector<1x32xf32>
    %11 = vector.broadcast %10 : vector<1x32xf32> to vector<16x32xf32>
    %12 = arith.addf %9, %11 : vector<16x32xf32>
    %cst_11 = arith.constant dense<0xFF800000> : vector<16xf32>
    %13 = vector.multi_reduction <maximumf>, %12, %cst_11 [1] : vector<16x32xf32> to vector<16xf32>
    %14 = vector.shape_cast %13 : vector<16xf32> to vector<16x1xf32>
    %15 = vector.broadcast %14 : vector<16x1xf32> to vector<16x32xf32>
    %16 = arith.subf %12, %15 : vector<16x32xf32>
    %17 = math.exp %16 : vector<16x32xf32>
    %cst_12 = arith.constant dense<0.000000e+00> : vector<16xf32>
    %18 = vector.multi_reduction <add>, %17, %cst_12 [1] : vector<16x32xf32> to vector<16xf32>
    %19 = vector.shape_cast %18 : vector<16xf32> to vector<16x1xf32>
    %20 = tpu.reciprocal %19 {approx = true} : vector<16x1xf32> -> vector<16x1xf32>
    %21 = arith.mulf %19, %20 : vector<16x1xf32>
    %cst_13 = arith.constant 2.000000e+00 : f32
    %22 = vector.broadcast %cst_13 : f32 to vector<16x1xf32>
    %23 = arith.subf %22, %21 : vector<16x1xf32>
    %24 = arith.mulf %20, %23 : vector<16x1xf32>
    %25 = vector.broadcast %24 : vector<16x1xf32> to vector<16x32xf32>
    %26 = arith.mulf %17, %25 : vector<16x32xf32>
    %c0_14 = arith.constant 0 : index
    %c0_15 = arith.constant 0 : index
    %27 = vector.load %arg6[%c0_14, %c0_15] : memref<16x32xf32, #tpu.memory_space<vmem>>, vector<16x32xf32>
    tpu.vector_store %arg6[%c0_14, %c0_15], %26 {strides = array<i32>} : memref<16x32xf32, #tpu.memory_space<vmem>>, vector<16x32xf32>,
    return
  }
  func.func @transform_0(%arg0: i32) -> (i32, i32) {
    %c0_i32 = arith.constant 0 : i32
    %c0_i32_0 = arith.constant 0 : i32
    return %arg0, %c0_i32 : i32, i32
  }
  func.func @transform_1(%arg0: i32) -> (i32, i32) {
    %c0_i32 = arith.constant 0 : i32
    %c0_i32_0 = arith.constant 0 : i32
    %c0_i32_1 = arith.constant 0 : i32
    return %c0_i32, %c0_i32_0 : i32, i32
  }
  func.func @transform_2(%arg0: i32) -> (i32, i32) {
    %c0_i32 = arith.constant 0 : i32
    %c0_i32_0 = arith.constant 0 : i32
    %c0_i32_1 = arith.constant 0 : i32
    return %c0_i32, %c0_i32_0 : i32, i32
  }
  func.func @transform_3(%arg0: i32) -> (i32, i32) {
    %c0_i32 = arith.constant 0 : i32
    %c0_i32_0 = arith.constant 0 : i32
    %c0_i32_1 = arith.constant 0 : i32
    return %c0_i32, %c0_i32_0 : i32, i32
  }
  func.func @transform_4(%arg0: i32) -> (i32, i32) {
    %c0_i32 = arith.constant 0 : i32
    %c0_i32_0 = arith.constant 0 : i32
    %c0_i32_1 = arith.constant 0 : i32
    return %c0_i32, %c0_i32_0 : i32, i32
  }
  func.func @transform_5(%arg0: i32) -> (i32, i32) {
    %c0_i32 = arith.constant 0 : i32
    %c0_i32_0 = arith.constant 0 : i32
    return %arg0, %c0_i32 : i32, i32
  }
}

</mosaic_0001>

<bundles_post_ra>
// kernel: tpu_custom_call.1
= control target key start
LH: loop header
LB: loop body
LE: loop exit
PB: predicated region body
PF: predicated region fallthrough
CT: control target
= control target key end

     0   :  { %vm32_vm0 = vcmask 130048   ;;  %s456_s0 = inlined_call_operand.vmem [shape: f32[16,16], index: 0, kind: input, shape index: {}]   ;;  %s457_s1 = inlined_call_operand.vmem [shape: f32[16,64], index: 1, kind: input, shape index: {}]   ;;  %s458_s2 = inlined_call_operand.vmem [shape: f32[1,64], index: 2, kind: input, shape index: {}]   ;;  %s459_s3 = inlined_call_operand.vmem [shape: f32[64,32], index: 3, kind: input, shape index: {}]   ;;  %s460_s4 = inlined_call_operand.vmem [shape: f32[1,32], index: 4, kind: input, shape index: {}]   ;;  %s461_s5 = inlined_call_operand.hbm [shape: f32[16,32], index: 5, kind: output, shape index: {}]  }
   0x1   :  { %v23_v0 = vld [vmem:[%s457_s1] sm:$0xff]  ;;  %v24_v1 = vld [vmem:[%s457_s1 + $0x8] sm:$0xff]  ;;  %v118_v7 = vld [vmem:[%s459_s3 + $0x10] sm:$0xff] }
   0x2   :  { %v21_v2 = vld [vmem:[%s456_s0] sm:$0xff]  ;;  %v306_v3 = vpack.c.bf16 %v24_v1, %v23_v0  ;;  %v117_v5 = vld [vmem:[%s459_s3 + $0x8] sm:$0xff]  ;;  %v119_v8 = vld [vmem:[%s459_s3 + $0x18] sm:$0xff] }
   0x3   :  { %284 = vmatprep.mubr.msk.f32.mxu0 %vm32_vm0, %v21_v2  ;;  %v116_v4 = vld [vmem:[%s459_s3] sm:$0xff]  ;;  %v314_v9 = vpack.c.bf16 %v119_v8, %v118_v7  ;;  %v121_v11 = vld [vmem:[%s459_s3 + $0x28] sm:$0xff] }
   0x4   :  { %v310_v6 = vpack.c.bf16 %v117_v5, %v116_v4  ;;  %307 = vmatprep.subr.bf16.mxu0 %v306_v3  ;;  %v120_v10 = vld [vmem:[%s459_s3 + $0x20] sm:$0xff] }
   0x5   :  { %10 = vsyncpa [#allocation3], 0  ;;  %309 = vmatpush3.bf16.msra.mxu0 %v306_v3  ;;  %v22_v12 = vld [vmem:[%s456_s0 + $0x8] sm:$0xff]  ;;  %v318_v13 = vpack.c.bf16 %v121_v11, %v120_v10  ;;  %v122_v14 = vld [vmem:[%s459_s3 + $0x30] sm:$0xff]  ;;  %vm131_vm1 = vcmask 523264   ;;  %vm213_vm2 = vcmask 261120  }
   0x6   :  { %311 = vmatprep.subr.bf16.mxu1 %v310_v6  ;;  %v123_v15 = vld [vmem:[%s459_s3 + $0x38] sm:$0xff]  ;;  %v260_v17 = vld [vmem:[%s458_s2] ss:$0 sm:$0xff]  ;;  %s361_s2 = smov [#allocation2]  }
   0x7   :  { %313 = vmatpush3.bf16.msra.mxu1 %v310_v6  ;;  %v322_v16 = vpack.c.bf16 %v123_v15, %v122_v14  ;;  %v263_v24 = vld [vmem:[%s460_s4] ss:$0 sm:$0xff]  ;;  %s249_s3 = sshll.u32 %s361_s2, 4  ;;  %s250_s3 = int_to_ptr.vmem [resolvable:$true] %s249_s3 }
   0x8   :  { %315 = vmatprep.subr.bf16.mxu1 %v314_v9  ;;  %285 = vmatmul.mubr.msk.f32.vlgmr.msra.gmra.mrb[0].mxu0 %vm32_vm0, %v22_v12  ;;  %s337_s4 = scalar_lea.vmem %s250_s3, 256  ;;  %p342_p1 = scmp.lt.s32.totalorder %s250_s3, %s250_s3 }
   0x9   :  { %p338_p0 = scmp.ne.s32.totalorder %s250_s3, %s337_s4  ;;  %p343_p2 = scmp.lt.s32.totalorder %s337_s4, %s337_s4 }
   0xb   :  { %317 = vmatpush3.bf16.msra.mxu1 %v314_v9  ;;  %p344_p3 = por %p343_p2, %p342_p1 }
   0xc   :  { %319 = vmatprep.subr.bf16.mxu1 %v318_v13 }
   0xd   :  { %p345_p4 = pnand %p344_p3, %p338_p0 }
   0xf   :  { %321 = vmatpush3.bf16.msra.mxu1 %v318_v13 }
  0x10   :  { %323 = vmatprep.subr.bf16.mxu1 %v322_v16 }
  0x13   :  { %325 = vmatpush3.bf16.msra.mxu1 %v322_v16 }
  0xdb   :  { %v286_v18 = vpop.f32.mrb[0].mxu0 }
  0xdc   :  { %v111_v19 = vadd.f32 %v286_v18, %v260_v17  ;;  %v105_v20 = vpop.f32.mrb[1].mxu0 }
  0xdd   :  { %v106_v21 = vadd.f32 %v260_v17, %v105_v20 }
  0xde   :  { %v115_v23 = vmax.f32 %v111_v19, 0.0 }
  0xdf   :  { %v114_v22 = vmax.f32 %v106_v21, 0.0 }
  0xe1   :  { %303 = vmatprep.mubr.msk.f32.mxu1 %vm131_vm1, %v114_v22 }
  0xe2   :  { %304 = vmatmul.mubr.msk.f32.vlgmr.msra.gmra.mrb[0].mxu1 %vm131_vm1, %v115_v23 }
 0x1b5   :  { %v305_v25 = vpop.f32.mrb[0].mxu1 }
 0x1b6   :  { %v204_v26 = vpop.f32.mrb[1].mxu1  ;;  %v210_v28 = vadd.f32 %v305_v25, %v263_v24 }
 0x1b7   :  { %v205_v27 = vadd.f32 %v263_v24, %v204_v26 }
 0x1b8   :  { %v217_v30 = vsel %vm213_vm2, %v210_v28, -inf }
 0x1b9   :  { %v214_v29 = vsel %vm213_vm2, %v205_v27, -inf }
 0x1ba   :  { %215 = vmax.xlane.f32.xlu0 %v214_v29 }
 0x1be   :  { %218 = vmax.xlane.f32.xlu0 %v217_v30 }
 0x247   :  { %v216_v31 = vpop.xlane.xlu0 %215 }
 0x248   :  { %v220_v32 = vsub.f32 %v205_v27, %v216_v31 }
 0x24a   :  { %v222_v33 = vmul.f32 1.442695, %v220_v32 }
 0x24b   :  { %v219_v34 = vpop.xlane.xlu0 %218 }
 0x24c   :  { %329 = vpow2.f32 %v222_v33  ;;  %v221_v35 = vsub.f32 %v210_v28, %v219_v34 }
 0x24e   :  { %v224_v36 = vmul.f32 1.442695, %v221_v35 }
 0x250   :  { %331 = vpow2.f32 %v224_v36 }
 0x256   :  { %v330_v37 = vpop.eup %329 }
 0x257   :  { %v226_v38 = vsel %vm213_vm2, %v330_v37, 0.0 }
 0x258   :  { %227 = vadd.xlane.f32.xlu1 %v226_v38 }
 0x25a   :  { %v332_v39 = vpop.eup %331 }
 0x25b   :  { %v229_v40 = vsel %vm213_vm2, %v332_v39, 0.0 }
 0x25c   :  { %230 = vadd.xlane.f32.xlu1 %v229_v40 }
 0x2e5   :  { %v228_v41 = vpop.xlane.xlu1 %227 }
 0x2e6   :  { %333 = vrcp.f32 %v228_v41 }
 0x2e9   :  { %v231_v42 = vpop.xlane.xlu1 %230 }
 0x2ea   :  { %335 = vrcp.f32 %v231_v42 }
 0x2f0   :  { %v334_v43 = vpop.eup %333 }
 0x2f1   :  { %v234_v44 = vmul.f32 %v334_v43, %v228_v41 }
 0x2f3   :  { %v236_v45 = vsub.f32 2.0, %v234_v44 }
 0x2f4   :  { %v336_v46 = vpop.eup %335 }
 0x2f5   :  { %v238_v47 = vmul.f32 %v334_v43, %v236_v45  ;;  %v235_v48 = vmul.f32 %v336_v46, %v231_v42 }
 0x2f7   :  { %v240_v49 = vmul.f32 %v330_v37, %v238_v47  ;;  %v237_v50 = vsub.f32 2.0, %v235_v48 }
 0x2f9   :  { %242 = vst.msk [vmem:[#allocation2] sm:$0xff] %vm213_vm2, %v240_v49  ;;  %v239_v51 = vmul.f32 %v336_v46, %v237_v50 }
 0x2fb   :  { %v241_v52 = vmul.f32 %v332_v39, %v239_v51 }
 0x2fd   :  { %243 = vst.msk [vmem:[#allocation2 + $0x8] sm:$0xff] %vm213_vm2, %v241_v52 }
 0x2fe   :  { %348 = shalt.err (!%p345_p4)
}
 0x2ff   :  { %s349_s21 = scalar_lea.hbm %s461_s5, 256 }
 0x300   :  { %p350_p5 = scmp.ne.s32.totalorder %s461_s5, %s349_s21  ;;  %p353_p6 = scmp.lt.u32.totalorder %s349_s21, %s461_s5 }
 0x302   :  { %p355_p7 = pnand %p353_p6, %p350_p5 }
 0x304   :  { %358 = shalt.err (!%p355_p7)
}
 0x305   :  { %s362_s26 = smov 128   ;;  %s363_s27 = smov 8  }
 0x306   :  { %255 = dma.vmem_to_hbm [thread:$0]  %s250_s3, 256, %s461_s5, [#allocation3], %s362_s26, %s362_s26, %s363_s27  }
 0x307   :  { %359 = dma.done.wait [#allocation3], 256  }
 0x308   :  { %360 = vsyncadd [#allocation3], 4294967040 }
 0x309   :  { %259 = vsyncpa [#allocation3], 1 }

</bundles_post_ra>
